<compile_context>
chip_gen: v7x
topology: tpu7x:2x2x1
jax: 0.10.0
libtpu: 0.0.40
codegen_flags: <defaults>
</compile_context>

<pallas_src>
import functools

import jax
import jax.numpy as jnp
from jax import lax
from jax.experimental import pallas as pl
from jax.experimental.pallas import tpu as pltpu


def _round_up(x, m):
    return (x + m - 1) // m * m


def _vmem_capacity_bytes():
    try:
        return int(pltpu.get_tpu_info().vmem_capacity_bytes)
    except Exception:
        return 64 * 1024 * 1024  # conservative fallback (v7x per-TC VMEM)


def _pick_tile_b(max_tile_b, batch):
    """Multiple of 8, clamped, and >=2 grid steps when possible (v7x megacore)."""
    tile_b = max(8, (max_tile_b // 8) * 8)
    tile_b = min(tile_b, 4096)
    two_step = max(8, _round_up(-(-batch // 2), 8))  # ceil(batch/2) rounded to 8
    return min(tile_b, two_step)


def _p_norm_scores(diff, p_norm):
    """(tile_b, d_pad) f32 -> (tile_b, 1) p-norm along the embedding dim."""
    tile_b, d_pad = diff.shape
    if p_norm == 1:
        contrib = jnp.abs(diff)
    elif p_norm == 2:
        contrib = diff * diff
    else:
        # TODO(synk): general p-norm (p not in {1, 2}) not implemented in-kernel.
        raise NotImplementedError("only p_norm in {1, 2} supported")
    # Lane-aligned 128-wide partial sums on the VPU, single cross-lane reduce.
    acc = contrib[:, 0:128]
    for j in range(1, d_pad // 128):
        acc = acc + contrib[:, j * 128:(j + 1) * 128]
    score = jnp.sum(acc, axis=1, keepdims=True)  # (tile_b, 1)
    if p_norm == 2:
        score = jnp.sqrt(score)
    return score


# ---------------------------------------------------------------------------
# Streaming kernel: pre-gathered (B, D) embeddings -> scores (lane-dense out).
# ---------------------------------------------------------------------------
def _transe_score_kernel(h_ref, r_ref, t_ref, o_ref, *, p_norm):
    tile_b = h_ref.shape[0]
    diff = h_ref[...] + r_ref[...] - t_ref[...]
    score = _p_norm_scores(diff, p_norm)
    # Lane-dense store: one (1, 1, tile_b) row, not a (tile_b, 1) column.
    o_ref[...] = score.reshape(1, 1, tile_b).astype(o_ref.dtype)


def transe_score_pallas(head_emb, rel_emb, tail_emb, *, p_norm=1):
    """head/rel/tail embeddings: (B, D) -> (B,) float32 scores."""
    B, D = head_emb.shape
    D_pad = _round_up(max(D, 128), 128)

    cap = _vmem_capacity_bytes()
    budget = int(0.6 * cap)
    # 3 inputs x 2 pipeline buffers x (tile_b, D_pad) f32 blocks.
    tile_b = _pick_tile_b(budget // (3 * 2 * D_pad * 4), B)
    B_pad = _round_up(B, tile_b)
    num_tiles = B_pad // tile_b

    def prep(x):
        x = x.astype(jnp.float32)
        return jnp.pad(x, ((0, B_pad - B), (0, D_pad - D)))

    head_emb, rel_emb, tail_emb = prep(head_emb), prep(rel_emb), prep(tail_emb)

    kernel = functools.partial(_transe_score_kernel, p_norm=p_norm)
    emb_spec = pl.BlockSpec((tile_b, D_pad), lambda i: (i, 0))
    out_spec = pl.BlockSpec((1, 1, tile_b), lambda i: (i, 0, 0))

    cost = pl.CostEstimate(
        flops=int(4 * B_pad * D_pad),
        transcendentals=int(B_pad if p_norm == 2 else 0),
        bytes_accessed=int(3 * B_pad * D_pad * 4 + B_pad * 4),
    )

    out = pl.pallas_call(
        kernel,
        out_shape=jax.ShapeDtypeStruct((num_tiles, 1, tile_b), jnp.float32),
        grid_spec=pltpu.PrefetchScalarGridSpec(
            num_scalar_prefetch=0,
            grid=(num_tiles,),
            in_specs=[emb_spec, emb_spec, emb_spec],
            out_specs=out_spec,
        ),
        compiler_params=pltpu.CompilerParams(
            dimension_semantics=("parallel",),
            vmem_limit_bytes=int(0.9 * cap),
        ),
        cost_estimate=cost,
    )(head_emb, rel_emb, tail_emb)
    return out.reshape(-1)[:B]


# ---------------------------------------------------------------------------
# Fused kernel: scalar-prefetched indices + VMEM-resident tables, exact
# dynamic row gather into a VMEM scratch, p-norm reduce, lane-dense output.
# ---------------------------------------------------------------------------
def _transe_fused_kernel(h_ids_ref, r_ids_ref, t_ids_ref, ent_ref, rel_ref,
                         o_ref, diff_ref, *, p_norm):
    tile_b = diff_ref.shape[0]
    base = pl.program_id(0) * tile_b

    def gather_row(i, carry):
        h = ent_ref[pl.ds(h_ids_ref[base + i], 1), :]
        r = rel_ref[pl.ds(r_ids_ref[base + i], 1), :]
        t = ent_ref[pl.ds(t_ids_ref[base + i], 1), :]
        diff_ref[pl.ds(i, 1), :] = h + r - t
        return carry

    lax.fori_loop(0, tile_b, gather_row, 0)

    score = _p_norm_scores(diff_ref[...], p_norm)
    o_ref[...] = score.reshape(1, 1, tile_b).astype(o_ref.dtype)


def transe_score_fused_pallas(entity_table, relation_table, head, relation, tail,
                              *, p_norm=1):
    """Fused exact gather + score. Tables must fit (double-buffered) in VMEM."""
    E_ent, D = entity_table.shape
    E_rel, D2 = relation_table.shape
    assert D == D2
    B = head.shape[0]

    D_pad = _round_up(max(D, 128), 128)
    E_ent_pad = _round_up(E_ent, 8)
    E_rel_pad = _round_up(E_rel, 8)
    ent = jnp.pad(entity_table.astype(jnp.float32),
                  ((0, E_ent_pad - E_ent), (0, D_pad - D)))
    rel = jnp.pad(relation_table.astype(jnp.float32),
                  ((0, E_rel_pad - E_rel), (0, D_pad - D)))

    cap = _vmem_capacity_bytes()
    budget = int(0.6 * cap)
    resident = 2 * (E_ent_pad + E_rel_pad) * D_pad * 4  # tables are double-buffered
    tile_b = _pick_tile_b(min((budget - resident) // (D_pad * 4), 1024), B)
    B_pad = _round_up(B, tile_b)
    num_tiles = B_pad // tile_b

    def prep_ids(ids):
        ids = ids.astype(jnp.int32).reshape(-1)
        return jnp.pad(ids, (0, B_pad - B))  # padded rows gather index 0, sliced off

    h_ids, r_ids, t_ids = prep_ids(head), prep_ids(relation), prep_ids(tail)

    kernel = functools.partial(_transe_fused_kernel, p_norm=p_norm)
    ent_spec = pl.BlockSpec((E_ent_pad, D_pad), lambda i, *_: (0, 0))  # resident
    rel_spec = pl.BlockSpec((E_rel_pad, D_pad), lambda i, *_: (0, 0))  # resident
    out_spec = pl.BlockSpec((1, 1, tile_b), lambda i, *_: (i, 0, 0))

    cost = pl.CostEstimate(
        flops=int(4 * B_pad * D_pad),
        transcendentals=int(B_pad if p_norm == 2 else 0),
        bytes_accessed=int((E_ent_pad + E_rel_pad) * D_pad * 4 + 4 * B_pad * 4),
    )

    out = pl.pallas_call(
        kernel,
        out_shape=jax.ShapeDtypeStruct((num_tiles, 1, tile_b), jnp.float32),
        grid_spec=pltpu.PrefetchScalarGridSpec(
            num_scalar_prefetch=3,
            grid=(num_tiles,),
            in_specs=[ent_spec, rel_spec],
            out_specs=out_spec,
            scratch_shapes=[pltpu.VMEM((tile_b, D_pad), jnp.float32)],
        ),
        compiler_params=pltpu.CompilerParams(
            dimension_semantics=("parallel",),
            vmem_limit_bytes=int(0.9 * cap),
        ),
        cost_estimate=cost,
    )(h_ids, r_ids, t_ids, ent, rel)
    return out.reshape(-1)[:B]


# ---------------------------------------------------------------------------
# Module wrapper (forward only).
# ---------------------------------------------------------------------------
class TransEPallas:
    """JAX/Pallas port of the PyTorch TransE module (forward only)."""

    def __init__(self, num_entities, num_relations, embedding_dim,
                 margin, p_norm=1, key=None):
        self.num_entities = num_entities
        self.num_relations = num_relations
        self.embedding_dim = embedding_dim
        self.margin = margin
        self.p_norm = p_norm

        if key is None:
            key = jax.random.PRNGKey(0)
        k_ent, k_rel = jax.random.split(key)

        # Deterministic xavier_uniform_: U(-a, a), a = sqrt(6/(fan_in+fan_out)).
        a_ent = (6.0 / (num_entities + embedding_dim)) ** 0.5
        a_rel = (6.0 / (num_relations + embedding_dim)) ** 0.5
        self.entity_embeddings = jax.random.uniform(
            k_ent, (num_entities, embedding_dim), jnp.float32, -a_ent, a_ent)
        self.relation_embeddings = jax.random.uniform(
            k_rel, (num_relations, embedding_dim), jnp.float32, -a_rel, a_rel)

        # Fused path eligibility: both (double-buffered) tables plus at least a
        # minimal diff scratch must fit in ~60% of this generation's VMEM.
        d_pad = _round_up(max(embedding_dim, 128), 128)
        resident = 2 * (_round_up(num_entities, 8) + _round_up(num_relations, 8)) * d_pad * 4
        self._fused_ok = resident + 8 * d_pad * 4 <= int(0.6 * _vmem_capacity_bytes())

    def __call__(self, head, relation, tail):
        # SMEM-prefetched index arrays cap the fused path's batch size.
        if self._fused_ok and head.shape[0] <= 32768:
            return transe_score_fused_pallas(
                self.entity_embeddings, self.relation_embeddings,
                head, relation, tail, p_norm=self.p_norm)
        # Tables too large for VMEM residency: XLA gather (jnp.take clamps OOB
        # indices, unlike torch) then the streaming kernel.
        # TODO(synk): manual HBM DMA row-gather to avoid the (B, D) round trip.
        head_emb = jnp.take(self.entity_embeddings, head, axis=0)
        rel_emb = jnp.take(self.relation_embeddings, relation, axis=0)
        tail_emb = jnp.take(self.entity_embeddings, tail, axis=0)
        return transe_score_pallas(head_emb, rel_emb, tail_emb, p_norm=self.p_norm)

    def loss_function(self, positive_score, negative_score):
        return jnp.sum(jax.nn.relu(positive_score - negative_score + self.margin))


if __name__ == "__main__":
    # --- Config 1: small tables, D = 128 -> fused (VMEM-resident) path. ---
    num_entities, num_relations, embedding_dim, margin, batch = 64, 16, 128, 1.0, 16
    model = TransEPallas(num_entities, num_relations, embedding_dim, margin,
                         p_norm=1, key=jax.random.PRNGKey(0))

    kh, kr, kt = jax.random.split(jax.random.PRNGKey(0), 3)
    head = jax.random.randint(kh, (batch,), 0, num_entities, dtype=jnp.int32)
    relation = jax.random.randint(kr, (batch,), 0, num_relations, dtype=jnp.int32)
    tail = jax.random.randint(kt, (batch,), 0, num_entities, dtype=jnp.int32)

    score = jax.block_until_ready(model(head, relation, tail))

    h_e = model.entity_embeddings[head]
    r_e = model.relation_embeddings[relation]
    t_e = model.entity_embeddings[tail]
    ref_l1 = jnp.sum(jnp.abs(h_e + r_e - t_e), axis=1)
    assert score.shape == (batch,)
    # Exact row gather -> tight tolerance now.
    assert jnp.allclose(score, ref_l1, atol=1e-4, rtol=1e-4)

    # Streaming kernel exercised directly on pre-gathered embeddings (L2 norm).
    score_stream = jax.block_until_ready(
        transe_score_pallas(h_e, r_e, t_e, p_norm=2))
    ref_l2 = jnp.sqrt(jnp.sum((h_e + r_e - t_e) ** 2, axis=1))
    assert score_stream.shape == (batch,)
    assert jnp.allclose(score_stream, ref_l2, atol=1e-4, rtol=1e-4)

    # --- Config 2: D not a multiple of 128 and an odd batch (padding paths). ---
    model2 = TransEPallas(50, 7, 96, 1.0, p_norm=1, key=jax.random.PRNGKey(1))
    b2 = 13
    kh2, kr2, kt2 = jax.random.split(jax.random.PRNGKey(2), 3)
    head2 = jax.random.randint(kh2, (b2,), 0, 50, dtype=jnp.int32)
    rel2 = jax.random.randint(kr2, (b2,), 0, 7, dtype=jnp.int32)
    tail2 = jax.random.randint(kt2, (b2,), 0, 50, dtype=jnp.int32)
    score2 = jax.block_until_ready(model2(head2, rel2, tail2))
    ref2 = jnp.sum(jnp.abs(model2.entity_embeddings[head2]
                           + model2.relation_embeddings[rel2]
                           - model2.entity_embeddings[tail2]), axis=1)
    assert score2.shape == (b2,)
    assert jnp.allclose(score2, ref2, atol=1e-4, rtol=1e-4)

    # Margin-ranking loss (pure jnp).
    loss = jax.block_until_ready(model.loss_function(score, score + 0.1))
    assert loss.shape == ()

    print("KERNEL_OK")
</pallas_src>

<mosaic_0001>
module attributes {stable_mosaic.version = 11 : i64} {
  func.func @_transe_fused_kernel(%arg0: i32, %arg1: memref<16xi32, #tpu.memory_space<smem>>, %arg2: memref<16xi32, #tpu.memory_space<smem>>, %arg3: memref<16xi32, #tpu.memory_space<smem>>, %arg4: memref<64x128xf32, #tpu.memory_space<vmem>>, %arg5: memref<16x128xf32, #tpu.memory_space<vmem>>, %arg6: memref<1x1x8xf32, #tpu.memory_space<vmem>>, %arg7: memref<8x128xf32, #tpu.memory_space<vmem>>) attributes {dimension_semantics = [#tpu.dimension_semantics<parallel>], iteration_bounds = array<i64: 2>, scalar_prefetch = 3 : i64, scratch_operands = 1 : i64, tpu.core_type = #tpu.core_type<tc>, window_params = [{pipeline_mode = #tpu.pipeline_mode<synchronous>, transform_indices = @transform_0, window_bounds = array<i64: 64, 128>}, {pipeline_mode = #tpu.pipeline_mode<synchronous>, transform_indices = @transform_1, window_bounds = array<i64: 16, 128>}, {transform_indices = @transform_2, window_bounds = array<i64: 1, 1, 8>}]} {
    %c8_i32 = arith.constant 8 : i32
    %0 = arith.muli %arg0, %c8_i32 : i32
    %c0_i32 = arith.constant 0 : i32
    %c8_i32_0 = arith.constant 8 : i32
    %1 = arith.addi %c0_i32, %c8_i32_0 : i32
    %c1_i32 = arith.constant 1 : i32
    scf.for %arg8 = %c0_i32 to %1 step %c1_i32  : i32 {
      %8 = arith.addi %0, %arg8 : i32
      %9 = arith.index_cast %8 : i32 to index
      %10 = memref.load %arg1[%9] : memref<16xi32, #tpu.memory_space<smem>>
      %11 = arith.index_cast %10 : i32 to index
      %c0_6 = arith.constant 0 : index
      %12 = vector.load %arg4[%11, %c0_6] : memref<64x128xf32, #tpu.memory_space<vmem>>, vector<1x128xf32>
      %13 = arith.addi %0, %arg8 : i32
      %14 = arith.index_cast %13 : i32 to index
      %15 = memref.load %arg2[%14] : memref<16xi32, #tpu.memory_space<smem>>
      %16 = arith.index_cast %15 : i32 to index
      %c0_7 = arith.constant 0 : index
      %17 = vector.load %arg5[%16, %c0_7] : memref<16x128xf32, #tpu.memory_space<vmem>>, vector<1x128xf32>
      %18 = arith.addi %0, %arg8 : i32
      %19 = arith.index_cast %18 : i32 to index
      %20 = memref.load %arg3[%19] : memref<16xi32, #tpu.memory_space<smem>>
      %21 = arith.index_cast %20 : i32 to index
      %c0_8 = arith.constant 0 : index
      %22 = vector.load %arg4[%21, %c0_8] : memref<64x128xf32, #tpu.memory_space<vmem>>, vector<1x128xf32>
      %23 = arith.addf %12, %17 : vector<1x128xf32>
      %24 = arith.subf %23, %22 : vector<1x128xf32>
      %25 = arith.index_cast %arg8 : i32 to index
      %c0_9 = arith.constant 0 : index
      %26 = vector.load %arg7[%25, %c0_9] : memref<8x128xf32, #tpu.memory_space<vmem>>, vector<1x128xf32>
      tpu.vector_store %arg7[%25, %c0_9], %24 {strides = array<i32>} : memref<8x128xf32, #tpu.memory_space<vmem>>, vector<1x128xf32>,
    }
    %c8_i32_1 = arith.constant 8 : i32
    %c0 = arith.constant 0 : index
    %c0_2 = arith.constant 0 : index
    %2 = vector.load %arg7[%c0, %c0_2] : memref<8x128xf32, #tpu.memory_space<vmem>>, vector<8x128xf32>
    %3 = math.absf %2 : vector<8x128xf32>
    %cst = arith.constant dense<0.000000e+00> : vector<8xf32>
    %4 = vector.multi_reduction <add>, %3, %cst [1] : vector<8x128xf32> to vector<8xf32>
    %5 = vector.shape_cast %4 : vector<8xf32> to vector<8x1xf32>
    %6 = vector.shape_cast %5 : vector<8x1xf32> to vector<1x1x8xf32>
    %c0_3 = arith.constant 0 : index
    %c0_4 = arith.constant 0 : index
    %c0_5 = arith.constant 0 : index
    %7 = vector.load %arg6[%c0_3, %c0_4, %c0_5] : memref<1x1x8xf32, #tpu.memory_space<vmem>>, vector<1x1x8xf32>
    tpu.vector_store %arg6[%c0_3, %c0_4, %c0_5], %6 {strides = array<i32>} : memref<1x1x8xf32, #tpu.memory_space<vmem>>, vector<1x1x8xf32>,
    return
  }
  func.func @transform_0(%arg0: i32, %arg1: memref<16xi32, #tpu.memory_space<smem>>, %arg2: memref<16xi32, #tpu.memory_space<smem>>, %arg3: memref<16xi32, #tpu.memory_space<smem>>) -> (i32, i32) {
    %c0_i32 = arith.constant 0 : i32
    %c0_i32_0 = arith.constant 0 : i32
    %c0_i32_1 = arith.constant 0 : i32
    return %c0_i32, %c0_i32_0 : i32, i32
  }
  func.func @transform_1(%arg0: i32, %arg1: memref<16xi32, #tpu.memory_space<smem>>, %arg2: memref<16xi32, #tpu.memory_space<smem>>, %arg3: memref<16xi32, #tpu.memory_space<smem>>) -> (i32, i32) {
    %c0_i32 = arith.constant 0 : i32
    %c0_i32_0 = arith.constant 0 : i32
    %c0_i32_1 = arith.constant 0 : i32
    return %c0_i32, %c0_i32_0 : i32, i32
  }
  func.func @transform_2(%arg0: i32, %arg1: memref<16xi32, #tpu.memory_space<smem>>, %arg2: memref<16xi32, #tpu.memory_space<smem>>, %arg3: memref<16xi32, #tpu.memory_space<smem>>) -> (i32, i32, i32) {
    %c0_i32 = arith.constant 0 : i32
    %c0_i32_0 = arith.constant 0 : i32
    %c0_i32_1 = arith.constant 0 : i32
    return %arg0, %c0_i32, %c0_i32_0 : i32, i32, i32
  }
}

</mosaic_0001>

<bundles_post_ra>
// kernel: tpu_custom_call.1
= control target key start
LH: loop header
LB: loop body
LE: loop exit
PB: predicated region body
PF: predicated region fallthrough
CT: control target
= control target key end

     0   :  { %s776_s0 = inlined_call_operand.hbm [shape: s32[16], index: 0, kind: input, shape index: {}]   ;;  %s777_s3 = inlined_call_operand.hbm [shape: f32[64,128], index: 3, kind: input, shape index: {}]   ;;  %s778_s4 = inlined_call_operand.hbm [shape: f32[16,128], index: 4, kind: input, shape index: {}]   ;;  %s779_s5 = inlined_call_operand.hbm [shape: f32[2,1,8], index: 5, kind: output, shape index: {}]   ;;  %s780_s1 = inlined_call_operand.vmem [shape: s32[16], index: 1, kind: input, shape index: {}]   ;;  %s781_s2 = inlined_call_operand.vmem [shape: s32[16], index: 2, kind: input, shape index: {}]  }
   0x1   :  { %s372_s20 = scalar_lea.hbm %s776_s0, 16 }
   0x2   :  { %p373_p0 = scmp.ne.s32.totalorder %s776_s0, %s372_s20  ;;  %p376_p1 = scmp.lt.u32.totalorder %s372_s20, %s776_s0 }
   0x4   :  { %p378_p2 = pnand %p376_p1, %p373_p0 }
   0x6   :  { %381 = shalt.err (!%p378_p2)  }
   0x7   :  { %s544_s25 = smov [#allocation4]   ;;  %s12_s30 = sshll.u32 %s780_s1, 4  ;;  %s13_s30 = int_to_ptr.vmem [resolvable:$true] %s12_s30 }
   0x8   :  { %11 = dma.hbm_to_smem %s776_s0, 16, %s544_s25, [#allocation3] }
   0x9   :  { %s16_s8 = sshll.u32 %s781_s2, 4  ;;  %s382_s9 = scalar_lea.vmem %s13_s30, 16  ;;  %s17_s8 = int_to_ptr.vmem [resolvable:$true] %s16_s8 }
   0xa   :  { %p383_p3 = scmp.ne.s32.totalorder %s13_s30, %s382_s9  ;;  %p387_p4 = scmp.lt.s32.totalorder %s13_s30, %s13_s30 }
   0xb   :  { %p388_p5 = scmp.lt.s32.totalorder %s382_s9, %s382_s9 }
   0xd   :  { %p389_p6 = por %p388_p5, %p387_p4 }
   0xf   :  { %p390_p7 = pnand %p389_p6, %p383_p3 }
  0x11   :  { %393 = shalt.err (!%p390_p7)  }
  0x12   :  { %s545_s10 = smov [#allocation5]   ;;  %s394_s0 = scalar_lea.vmem %s17_s8, 16 }
  0x13   :  { %15 = dma.vmem_to_smem %s13_s30, 16, %s545_s10, [#allocation3] }
  0x14   :  { %p395_p8 = scmp.ne.s32.totalorder %s17_s8, %s394_s0  ;;  %p399_p9 = scmp.lt.s32.totalorder %s17_s8, %s17_s8 }
  0x15   :  { %p400_p10 = scmp.lt.s32.totalorder %s394_s0, %s394_s0 }
  0x17   :  { %p401_p11 = por %p400_p10, %p399_p9 }
  0x19   :  { %p402_p12 = pnand %p401_p11, %p395_p8 }
  0x1b   :  { %405 = shalt.err (!%p402_p12)  }
  0x1c   :  { %s546_s1 = smov [#allocation6]  }
  0x1d   :  { %19 = dma.vmem_to_smem %s17_s8, 16, %s546_s1, [#allocation3] }
  0x1e   :  { %510 = dma.done.wait [#allocation3], 48 }
  0x1f   :  { %511 = vsyncadd [#allocation3], 4294967248 }
  0x20   :  { %21 = sfence }
  0x21   :  { %22 = vsyncpa [#allocation8], 0 }
  0x22   :  { %23 = vsyncpa [#allocation11], 0 }
  0x23   :  { %24 = vsyncpa [#allocation9], 0 }
  0x24   :  { %26 = vsyncpa [#allocation9 + $0x1], 0  ;;  %s600_s2 = smov 0   ;;  %s602_s11 = smov 0  }
  0x25   :  { %s604_s12 = smov 0   ;;  %s606_s13 = smov 0  }
  0x26 LB: > { %s621_s14 = sadd.s32 4294967295, %s538_s13   ;;  %s288_s15 = sadd.s32 4294967294, %s538_s13   ;;  %s538_s13 = sphi %s606_s13, %s799_s13   ;;  %s534_s12 = sphi %s604_s12, %s798_s12   ;;  %s530_s11 = sphi %s602_s11, %s797_s11   ;;  %s526_s2 = sphi %s600_s2, %s796_s2  }
  0x27   : > { %s625_s16 = sadd.s32 1, %s538_s13   ;;  %s81_s17 = sadd.s32 1, %s534_s12 }
  0x28   : > { %s78_s18 = ssub.s32 %s538_s13, %s625_s16  ;;  %p91_p13 = scmp.ne.s32.totalorder %s534_s12, %s530_s11 }
  0x29   : > { %p79_p0 = scmp.eq.s32.totalorder %s78_s18, 0  ;;  %p92_p1 = scmp.eq.s32.totalorder %s621_s14, 1 }
  0x2a   : > { %p97_p2 = scmp.ne.s32.totalorder %s530_s11, %s526_s2  ;;  %p98_p3 = scmp.eq.s32.totalorder %s288_s15, 1 }
  0x2b   : > { %s636_s19 = scalar_select %p79_p0, %s534_s12, %s81_s17  }
  0x2c   : > { %p638_p4 = por %p92_p1, %p91_p13  ;;  %p642_p5 = por %p98_p3, %p97_p2 }
  0x2d   : > { %p289_p6 = scmp.ge.s32.totalorder %s538_s13, 1  ;;  %p105_p7 = scmp.lt.s32.totalorder %s538_s13, 3 }
  0x2e   : > { %s785_s20 = scalar_select %p638_p4, 1, 0 }
  0x2f   : > { %s786_s21 = scalar_select %p642_p5, 1, 0 }
  0x30   : > { %p782_p8 = scmp.eq.s32.totalorder %s621_s14, 0  ;;  %p649_p9 = pnand %p289_p6, %p105_p7 }
  0x31   : > { %s547_s23 = smov [#allocation7]   ;;  %s548_s26 = smov [#allocation10]  }
  0x32   : > { %s787_s22 = scalar_select %p649_p9, 1, 0 }
  0x33   : > { %s117_s24 = sshll.u32 %s547_s23, 4  ;;  %p309_p10 = pneg %p649_p9  ;;  %s118_s24 = int_to_ptr.vmem [resolvable:$true] %s117_s24 }
  0x34   : > { %s130_s27 = sshll.u32 %s548_s26, 4  ;;  %s406_s30 = scalar_lea.hbm %s777_s3, 1024  ;;  %s661_s27 = int_to_ptr.vmem [resolvable:$true] %s130_s27 }
  0x35   : > { %p657_p11 = pnand %p782_p8, %p309_p10  ;;  %p407_p12 = scmp.ne.s32.totalorder %s777_s3, %s406_s30 }
  0x36   : > { %p413_p2 = scmp.lt.u32.totalorder %s406_s30, %s777_s3 }
  0x37   : > { %p408_p13 = pneg %p657_p11 }
  0x39   : > { %p409_p0 = pnand %p408_p13, %p407_p12 }
  0x3b   : > { %p410_p1 = pneg %p409_p0 }
  0x3d   : > { %p415_p3 = pnand %p413_p2, %p410_p1 }
  0x3f   : > { %418 = shalt.err (!%p415_p3)
}
  0x40   : > { %s419_s10 = scalar_lea.vmem %s118_s24, 1024  ;;  %p427_p8 = scmp.lt.s32.totalorder %s118_s24, %s118_s24 }
  0x41   : > { %p420_p6 = scmp.ne.s32.totalorder %s118_s24, %s419_s10  ;;  %p428_p5 = scmp.lt.s32.totalorder %s419_s10, %s419_s10 }
  0x43   : > { %p422_p7 = pnand %p420_p6, %p408_p13  ;;  %p429_p4 = por %p428_p5, %p427_p8 }
  0x45   : > { %p423_p10 = pneg %p422_p7 }
  0x47   : > { %p430_p9 = pnand %p429_p4, %p423_p10 }
  0x49   : > { %433 = shalt.err (!%p430_p9)
}
  0x4a   : > { %s549_s0 = smov 128   ;;  %s550_s1 = smov 8  }
  0x4b   : > { %312 = dma.hbm_to_vmem [thread:$0]  (!%p657_p11), %s777_s3, 1024, %s118_s24, [#allocation8], %s549_s0, %s549_s0, %s550_s1  }
  0x4c   : > { %s434_s26 = scalar_lea.hbm %s778_s4, 256 }
  0x4d   : > { %p435_p12 = scmp.ne.s32.totalorder %s778_s4, %s434_s26  ;;  %p441_p8 = scmp.lt.u32.totalorder %s434_s26, %s778_s4 }
  0x4f   : > { %p437_p4 = pnand %p435_p12, %p408_p13 }
  0x51   : > { %p438_p5 = pneg %p437_p4 }
  0x53   : > { %p443_p9 = pnand %p441_p8, %p438_p5 }
  0x55   : > { %446 = shalt.err (!%p443_p9)
}
  0x56   : > { %s447_s24 = scalar_lea.vmem %s661_s27, 256  ;;  %p455_p3 = scmp.lt.s32.totalorder %s661_s27, %s661_s27 }
  0x57   : > { %p448_p0 = scmp.ne.s32.totalorder %s661_s27, %s447_s24  ;;  %p456_p6 = scmp.lt.s32.totalorder %s447_s24, %s447_s24 }
  0x59   : > { %p450_p1 = pnand %p448_p0, %p408_p13  ;;  %p457_p7 = por %p456_p6, %p455_p3 }
  0x5b   : > { %p451_p2 = pneg %p450_p1 }
  0x5d   : > { %p458_p10 = pnand %p457_p7, %p451_p2 }
  0x5f   : > { %461 = shalt.err (!%p458_p10)
}
  0x60   : > { %315 = dma.hbm_to_vmem [thread:$0]  (!%p657_p11), %s778_s4, 256, %s661_s27, [#allocation11], %s549_s0, %s549_s0, %s550_s1  }
  0x61   : > { %p789_p12 = scmp.ne.s32.totalorder %s787_s22, 0 }
  0x62   : > { %p790_p4 = scmp.eq.s32.totalorder (!%p789_p12), %s621_s14, 0 }
  0x63   : > { %146 = sbr.rel (%p789_p12) target bundleno = 294 (0x126), region = 28 }
  0x6a   : > { %513 = dma.done.wait (%p790_p4), [#allocation8], 1024   ;;  %p791_p13 = pmov %p790_p4 }
  0x6b   : > { %p792_p5 = pmov %p790_p4 }
  0x6c   : > { %515 = vsyncadd (%p791_p13), [#allocation8], 4294966272 }
  0x6d   : > { %517 = dma.done.wait (%p792_p5), [#allocation11], 256   ;;  %p793_p8 = pmov %p790_p4 }
  0x6e   : > { %s164_s25 = sand.u32 1, %s530_s11   ;;  %s295_s27 = sshll.u32 %s621_s14, 3 }
  0x6f   : > { %519 = vsyncadd (%p793_p8), [#allocation11], 4294967040  ;;  %s724_s22 = scalar_lea.vmem [#allocation12], %s164_s25  ;;  %s540_s9 = smov 0  }
  0x70 LB: >> { %s173_s10 = sadd.s32 %s542_s9, %s295_s27  ;;  %s185_s26 = scalar_lea.vmem [#allocation2], %s542_s9  ;;  %s542_s9 = sphi %s540_s9, %s172_s9  }
  0x71   : >> { %s174_s0 = sld [smem:[#allocation4 + %s173_s10]]  ;;  %s172_s9 = sadd.s32 1, %s542_s9  }
  0x72   : >> { %s177_s1 = sld [smem:[#allocation5 + %s173_s10]]  ;;  %p169_p11 = scmp.ge.s32.totalorder %s172_s9, 8  }
  0x73   : >> { %s180_s15 = sld [smem:[#allocation6 + %s173_s10]]  ;;  %v192_v7 = vlaneseq (%p169_p11)  ;;  %s296_s28 = sshll.u32 (%p169_p11), %s621_s14, 4  ;;  %vm199_vm0 = vcmask (%p169_p11), 57344  }
  0x74   : > { %s214_s29 = sshll.u32 (%p169_p11), %s724_s22, 4  ;;  %s731_s24 = scalar_lea.hbm (%p169_p11), %s779_s5, %s296_s28  ;;  %s733_s29 = int_to_ptr.vmem [resolvable:$true] %s214_s29 }
  0x75   : > { %v193_v8 = vand.u32 (%p169_p11), 127, %v192_v7  ;;  %v195_v9 = vshrl.u32 (%p169_p11), %v192_v7, 7  ;;  %s202_s7 = scalar_lea.sflag (%p169_p11), [#allocation9], %s164_s25  ;;  %s462_s8 = scalar_lea.vmem (%p169_p11), %s733_s29, 16 }
  0x76   : > { %p463_p9 = scmp.ne.s32.totalorder (%p169_p11), %s733_s29, %s462_s8  ;;  %p794_p0 = scmp.ne.s32.totalorder (%p169_p11), %s785_s20, 0 }
  0x77   : >> { %s175_s17 = scalar_lea.vmem [#allocation7], %s174_s0  ;;  %v196_v10 = vsub.s32 (%p169_p11), %v193_v8, %v195_v9  ;;  %s551_s14 = smov (%p169_p11), [#allocation12]  }
  0x78   : >> { %v176_v0 = vld [vmem:[%s175_s17] sm:$0x1]  ;;  %s178_s18 = scalar_lea.vmem [#allocation10], %s177_s1  ;;  %171 = sbr.rel (!%p169_p11) target bundleno = 112 (0x70), region = 80 }
  0x79   : >> { %v179_v1 = vld [vmem:[%s178_s18] sm:$0x1]  ;;  %s181_s23 = scalar_lea.vmem [#allocation7], %s180_s15  ;;  %p464_p1 = pnand (%p169_p11), %p463_p9, %p794_p0 }
  0x7a   : >> { %v182_v2 = vld [vmem:[%s181_s23] sm:$0x1]  ;;  %v183_v3 = vadd.f32 %v179_v1, %v176_v0  ;;  %s466_s27 = sshll.u32 (%p169_p11), %s551_s14, 4  ;;  %s467_s27 = int_to_ptr.vmem [resolvable:$false] %s466_s27 }
  0x7b   : > { %p465_p2 = pneg (%p169_p11), %p464_p1  ;;  %s468_s9 = scalar_lea.vmem (%p169_p11), %s467_s27, 32 }
  0x7c   : >> { %v184_v4 = vsub.f32 %v183_v3, %v182_v2  ;;  %p469_p3 = scmp.lt.s32.totalorder (%p169_p11), %s733_s29, %s467_s27  ;;  %p470_p6 = scmp.lt.s32.totalorder (%p169_p11), %s468_s9, %s462_s8 }
  0x7e   : >> { %186 = vst [vmem:[%s185_s26] sm:$0x1] %v184_v4  ;;  %p471_p7 = por (%p169_p11), %p470_p6, %p469_p3 }
  0x80   : > { %p472_p10 = pnand %p471_p7, %p465_p2 }
  0x85   : > { %v187_v5 = vld [vmem:[#allocation2] sm:$0xff] }
  0x86   : > { %v188_v6 = vand.u32 2147483647, %v187_v5 }
  0x88   : > { %189 = vadd.xlane.f32.xlu0 %v188_v6 }
 0x115   : > { %v190_v11 = vpop.xlane.xlu0 %189 }
 0x116   : > { %v197_v12 = vrot.slane %v190_v11, %v196_v10 }
 0x118   : > { %200 = vst.msk [vmem:[%s724_s22] sm:$0x1] %vm199_vm0, %v197_v12 }
 0x119   : > { %475 = shalt.err (!%p472_p10)
}
 0x11a   : > { %s476_s25 = scalar_lea.hbm %s731_s24, 16  ;;  %s480_s0 = scalar_lea.hbm %s779_s5, 32 }
 0x11b   : > { %p477_p12 = scmp.ne.s32.totalorder %s731_s24, %s476_s25  ;;  %p481_p5 = scmp.lt.u32.totalorder %s731_s24, %s779_s5 }
 0x11c   : > { %p482_p8 = scmp.lt.u32.totalorder %s480_s0, %s476_s25  ;;  %p484_p9 = scmp.lt.u32.totalorder %s476_s25, %s731_s24 }
 0x11d   : > { %p478_p4 = pnand %p477_p12, %p794_p0 }
 0x11e   : > { %p483_p11 = por %p482_p8, %p481_p5 }
 0x11f   : > { %p479_p13 = pneg %p478_p4 }
 0x120   : > { %p485_p1 = por %p484_p9, %p483_p11 }
 0x122   : > { %p486_p2 = pnand %p485_p1, %p479_p13 }
 0x124   : > { %489 = shalt.err (!%p486_p2)
}
 0x125   : > { %307 = dma.vmem_to_hbm [thread:$0]  (%p794_p0), %s733_s29, 16, %s731_s24, %s202_s7  }
 0x126 PF: > { %p324_p3 = scmp.ge.s32.totalorder %s538_s13, 2  ;;  %s226_s17 = sand.u32 1, %s526_s2  }
 0x127   : > { %p795_p6 = scmp.ne.s32.totalorder %s786_s21, 0  ;;  %s227_s18 = scalar_lea.sflag [#allocation9], %s226_s17 }
 0x129   : > { %p317_p7 = pnand %p324_p3, %p795_p6 }
 0x12b   : > { %521 = dma.done.wait (!%p317_p7), %s227_s18, 16  }
 0x12c   : > { %523 = vsyncadd (!%p317_p7), %s227_s18, 4294967280  ;;  %p29_p10 = scmp.ge.s32.totalorder %s625_s16, 4   ;;  %s796_s2 = smov %s530_s11 }
 0x12d   : > { %s797_s11 = smov %s534_s12  ;;  %s798_s12 = smov %s636_s19 }
 0x12e   : > { %s799_s13 = smov %s625_s16  ;;  %31 = sbr.rel (!%p29_p10) target bundleno = 38 (0x26), region = 91 }
 0x135   :  { %231 = vsyncpa [#allocation8], 1 }
 0x136   :  { %233 = vsyncpa [#allocation8 + $0x1], 1 }
 0x137   :  { %234 = vsyncpa [#allocation11], 1 }
 0x138   :  { %235 = vsyncpa [#allocation9], 1 }
 0x139   :  { %237 = vsyncpa [#allocation9 + $0x1], 1 }

</bundles_post_ra>
